<compile_context>
chip_gen: v7x
topology: tpu7x:2x2x1
jax: 0.10.0
libtpu: 0.0.40
codegen_flags: <defaults>
</compile_context>

<pallas_src>
import functools

import jax
import jax.numpy as jnp
from jax import lax
from jax.experimental import pallas as pl
from jax.experimental.pallas import tpu as pltpu

# Layer sizes of MLPDiff
DIMS = [768, 1024, 128, 64, 16, 1]


def mlp_kernel(x_ref, w_ref, b_ref, o_ref):
    """One batch tile of the fully-folded MLPDiff (eval mode).

    x_ref: (tb, 768) input tile, f32
    w_ref: (1, 768)  folded weight row (W1@W2@W3@W4@W5)^T, f32 (resident)
    b_ref: (1, 1)    folded bias, f32 scalar in SMEM
    o_ref: (1, tb)   lane-dense output row for this batch tile
    """
    # Contract the 768-dim of both operands (NT dimension numbers) so the
    # result is produced directly as a lane-dense (1, tb) row instead of a
    # lane-sparse (tb, 1) column.
    y = lax.dot_general(
        w_ref[...], x_ref[...],
        dimension_numbers=(((1,), (1,)), ((), ())),
        preferred_element_type=jnp.float32)
    o_ref[...] = (y + b_ref[0, 0]).astype(o_ref.dtype)


def _pick_tile(B):
    """Batch tile: multiple of 128, <= 512, >= 2 grid steps when possible."""
    tb = 512
    while tb > 128 and B <= tb:
        tb //= 2
    return tb


@functools.partial(jax.jit, static_argnames=("tb",))
def mlp_diff_forward(embed, params, tb=None):
    """embed: [B, 768] float32.  params: list of (W_in_out, b) pairs."""
    B, D = embed.shape
    assert D == DIMS[0]
    if tb is None:
        tb = _pick_tile(B)
    assert tb % 128 == 0, "batch tile must be lane/MXU aligned"

    # Host-side fold of the whole affine stack (exact in eval mode).
    hp = lax.Precision.HIGHEST
    (w1, b1), *rest = params
    w_all, b_all = w1, b1
    for w, b in rest:
        w_all = jnp.dot(w_all, w, precision=hp)          # -> (768, dout)
        b_all = jnp.dot(b_all, w, precision=hp) + b      # -> (1, dout)
    w_row = w_all.T.astype(jnp.float32)                  # (1, 768)
    b_all = b_all.astype(jnp.float32)                    # (1, 1)

    num_steps = pl.cdiv(B, tb)
    Bp = num_steps * tb                                  # padded output slab

    out = pl.pallas_call(
        mlp_kernel,
        out_shape=jax.ShapeDtypeStruct((1, Bp), jnp.float32),
        grid_spec=pltpu.PrefetchScalarGridSpec(
            num_scalar_prefetch=0,
            grid=(num_steps,),
            in_specs=[
                # x streamed per batch tile; last block may extend past B
                # (undefined rows -> sliced-off output columns).
                pl.BlockSpec((tb, DIMS[0]), lambda i: (i, 0)),
                # Folded weight row: constant index map -> fetched once,
                # stays resident in VMEM (~3 KiB).
                pl.BlockSpec((1, DIMS[0]), lambda i: (0, 0)),
                # Folded scalar bias in SMEM.
                pl.BlockSpec(memory_space=pltpu.MemorySpace.SMEM),
            ],
            # Lane-dense output row per grid step.
            out_specs=pl.BlockSpec((1, tb), lambda i: (0, i)),
        ),
        compiler_params=pltpu.CompilerParams(
            dimension_semantics=("parallel",)),
    )(embed, w_row, b_all)

    return out.reshape(Bp, 1)[:B]


def init_params(key):
    """Deterministic synthetic parameters, torch-Linear-like init.

    Returns list of (W, b) with W shaped (in_features, out_features)
    (i.e. already transposed vs. torch's (out, in) layout)."""
    params = []
    for li in range(len(DIMS) - 1):
        din, dout = DIMS[li], DIMS[li + 1]
        key, kw, kb = jax.random.split(key, 3)
        bound = 1.0 / jnp.sqrt(din)
        w = jax.random.uniform(kw, (din, dout), jnp.float32, -bound, bound)
        b = jax.random.uniform(kb, (1, dout), jnp.float32, -bound, bound)
        params.append((w, b))
    return params


def mlp_diff_ref(embed, params):
    """Pure-JAX layered reference (eval-mode dropout = identity), f32."""
    h = embed
    for w, b in params:
        h = jnp.dot(h, w, precision=lax.Precision.HIGHEST) + b
    return h


if __name__ == "__main__":
    key = jax.random.PRNGKey(0)
    key, kx = jax.random.split(key)
    params = init_params(key)

    # B=384: tb=256 -> 2 parallel grid steps, partial last block (no-pad path).
    # B=130: tb=128 -> 2 steps, heavily partial last block (2 valid rows).
    for B in (384, 130):
        kx, kb = jax.random.split(kx)
        embed = jax.random.normal(kb, (B, DIMS[0]), jnp.float32)

        ref = mlp_diff_ref(embed, params)
        out = mlp_diff_forward(embed, params)
        jax.block_until_ready(out)

        assert out.shape == (B, 1), out.shape
        err = float(jnp.max(jnp.abs(out - ref)))
        assert err < 1e-2, (B, err)

    print("KERNEL_OK")
</pallas_src>

<mosaic_0001>
module attributes {stable_mosaic.version = 11 : i64} {
  func.func @mlp_kernel(%arg0: i32, %arg1: memref<256x768xf32, #tpu.memory_space<vmem>>, %arg2: memref<1x768xf32, #tpu.memory_space<vmem>>, %arg3: memref<1x1xf32, #tpu.memory_space<smem>>, %arg4: memref<1x256xf32, #tpu.memory_space<vmem>>) attributes {dimension_semantics = [#tpu.dimension_semantics<parallel>], iteration_bounds = array<i64: 2>, scalar_prefetch = 0 : i64, scratch_operands = 0 : i64, tpu.core_type = #tpu.core_type<tc>, window_params = [{transform_indices = @transform_0, window_bounds = array<i64: 256, 768>}, {pipeline_mode = #tpu.pipeline_mode<synchronous>, transform_indices = @transform_1, window_bounds = array<i64: 1, 768>}, {transform_indices = @transform_2, window_bounds = array<i64: 1, 1>}, {transform_indices = @transform_3, window_bounds = array<i64: 1, 256>}]} {
    %c0 = arith.constant 0 : index
    %c0_0 = arith.constant 0 : index
    %0 = vector.load %arg2[%c0, %c0_0] : memref<1x768xf32, #tpu.memory_space<vmem>>, vector<1x768xf32>
    %c0_1 = arith.constant 0 : index
    %c0_2 = arith.constant 0 : index
    %1 = vector.load %arg1[%c0_1, %c0_2] : memref<256x768xf32, #tpu.memory_space<vmem>>, vector<256x768xf32>
    %cst = arith.constant dense<0.000000e+00> : vector<1x256xf32>
    %2 = tpu.matmul %0, %1, %cst {dimension_numbers = #tpu.dot_dimension_numbers<[1], [1], [0], [0], [0, 0, 1, 0], [], []>} : vector<1x768xf32>, vector<256x768xf32>, vector<1x256xf32> -> vector<1x256xf32>
    %c0_3 = arith.constant 0 : index
    %c0_4 = arith.constant 0 : index
    %3 = memref.load %arg3[%c0_3, %c0_4] : memref<1x1xf32, #tpu.memory_space<smem>>
    %4 = vector.broadcast %3 : f32 to vector<1x256xf32>
    %5 = arith.addf %2, %4 : vector<1x256xf32>
    %c0_5 = arith.constant 0 : index
    %c0_6 = arith.constant 0 : index
    %6 = vector.load %arg4[%c0_5, %c0_6] : memref<1x256xf32, #tpu.memory_space<vmem>>, vector<1x256xf32>
    tpu.vector_store %arg4[%c0_5, %c0_6], %5 {strides = array<i32>} : memref<1x256xf32, #tpu.memory_space<vmem>>, vector<1x256xf32>,
    return
  }
  func.func @transform_0(%arg0: i32) -> (i32, i32) {
    %c0_i32 = arith.constant 0 : i32
    %c0_i32_0 = arith.constant 0 : i32
    return %arg0, %c0_i32 : i32, i32
  }
  func.func @transform_1(%arg0: i32) -> (i32, i32) {
    %c0_i32 = arith.constant 0 : i32
    %c0_i32_0 = arith.constant 0 : i32
    %c0_i32_1 = arith.constant 0 : i32
    return %c0_i32, %c0_i32_0 : i32, i32
  }
  func.func @transform_2(%arg0: i32) -> (i32, i32) {
    %c0_i32 = arith.constant 0 : i32
    %c0_i32_0 = arith.constant 0 : i32
    %c0_i32_1 = arith.constant 0 : i32
    return %c0_i32, %c0_i32_0 : i32, i32
  }
  func.func @transform_3(%arg0: i32) -> (i32, i32) {
    %c0_i32 = arith.constant 0 : i32
    %c0_i32_0 = arith.constant 0 : i32
    return %c0_i32, %arg0 : i32, i32
  }
}

</mosaic_0001>

<bundles_post_ra>
// kernel: mlp_diff_forward.1
= control target key start
LH: loop header
LB: loop body
LE: loop exit
PB: predicated region body
PF: predicated region fallthrough
CT: control target
= control target key end

     0   :  { %s963_s14 = smov 0   ;;  %s1200_s0 = inlined_call_operand.vmem [shape: f32[384,768], index: 0, kind: input, shape index: {}]   ;;  %s1201_s1 = inlined_call_operand.vmem [shape: f32[1,768], index: 1, kind: input, shape index: {}]   ;;  %s1202_s2 = inlined_call_operand.<no memory space> [shape: f32[1,1], index: 2, kind: input, shape index: {}]   ;;  %s1203_s3 = inlined_call_operand.vmem [shape: f32[1,512], index: 3, kind: output, shape index: {}]  }
   0x1   :  { %8 = sst [smem:[#allocation2]] %s1202_s2 }
   0x2 LB: > { %s713_s15 = sadd.s32 4294967295, %s937_s14   ;;  %p717_p0 = scmp.ge.s32.totalorder %s937_s14, 1  ;;  %s937_s14 = sphi %s963_s14, %s14_s14  }
   0x3   : > { %p150_p1 = scmp.lt.s32.totalorder %s937_s14, 3 }
   0x5   : > { %p151_p2 = pnand %p717_p0, %p150_p1 }
   0x6   : > { %s718_s16 = sshll.u32 (!%p151_p2), %s713_s15, 5  ;;  %v397_v0 = vlaneseq (!%p151_p2)  ;;  %v979_v2 = vld [vmem:[%s1201_s1] sm:$0x3f] (!%p151_p2)  ;;  %s394_s22 = sld [smem:[#allocation2]] (!%p151_p2) }
   0x7   : > { %154 = sbr.rel (%p151_p2) target bundleno = 499 (0x1f3), region = 32  ;;  %p185_p3 = scmp.lt.s32.totalorder (!%p151_p2), %s718_s16, 47 }
   0x8   : > { %v974_v1 = vshrl.u32 (!%p151_p2), %v397_v0, 7  ;;  %s720_s23 = sshll.u32 (!%p151_p2), %s713_s15, 1  ;;  %vm660_vm0 = vcmp.lt.s32.totalorder (!%p151_p2), %v397_v0, 256 }
   0x9   : > { %p197_p4 = scmp.lt.s32.totalorder (!%p151_p2), %s720_s23, 3 }
   0xa   : > { %v411_v3 = vsub.s32 (!%p151_p2), 3, %v974_v1 }
   0xc   : > { %v412_v11 = vrot.slane (!%p151_p2), %v979_v2, %v411_v3 }
   0xe   : > { %s1205_s16 = smov (!%p185_p3, %s718_s16), 47  ;;  %562 = vmatprep.mubr.f32.mxu0 %v412_v11  ;;  %s1207_s23 = smov (!%p197_p4, %s720_s23), 3 }
   0xf   : > { %s921_s2 = smul.u32 48, %s1205_s16  ;;  %s199_s26 = scalar_lea.vmem %s1203_s3, %s1207_s23 }
  0x11   : > { %s984_s21 = scalar_lea.vmem %s1200_s0, %s921_s2 }
  0x12   : > { %v205_v4 = vld [vmem:[%s984_s21 + $0x18] sm:$0xff]  ;;  %v211_v5 = vld [vmem:[%s984_s21 + $0x48] sm:$0xff]  ;;  %v204_v6 = vld [vmem:[%s984_s21 + $0x10] sm:$0xff] }
  0x13   : > { %v787_v7 = vpack.c.bf16 %v211_v5, %v205_v4  ;;  %v210_v8 = vld [vmem:[%s984_s21 + $0x40] sm:$0xff]  ;;  %v217_v9 = vld [vmem:[%s984_s21 + $0x78] sm:$0xff]  ;;  %v223_v10 = vld [vmem:[%s984_s21 + $0xa8] sm:$0xff] }
  0x14   : > { %v789_v12 = vpack.c.bf16 %v210_v8, %v204_v6  ;;  %v791_v13 = vpack.c.bf16 %v223_v10, %v217_v9  ;;  %v216_v14 = vld [vmem:[%s984_s21 + $0x70] sm:$0xff]  ;;  %v222_v15 = vld [vmem:[%s984_s21 + $0xa0] sm:$0xff]  ;;  %v229_v16 = vld [vmem:[%s984_s21 + $0xd8] sm:$0xff] }
  0x15   : > { %788 = vmatprep.subr.bf16.mxu0 %v787_v7  ;;  %v235_v17 = vld [vmem:[%s984_s21 + $0x108] sm:$0xff]  ;;  %v793_v18 = vpack.c.bf16 %v222_v15, %v216_v14  ;;  %v228_v20 = vld [vmem:[%s984_s21 + $0xd0] sm:$0xff]  ;;  %v234_v21 = vld [vmem:[%s984_s21 + $0x100] sm:$0xff] }
  0x16   : > { %790 = vmatpush1.bf16.xpose.msra.mxu0 %v789_v12  ;;  %v795_v19 = vpack.c.bf16 %v235_v17, %v229_v16  ;;  %v241_v22 = vld [vmem:[%s984_s21 + $0x138] sm:$0xff]  ;;  %v247_v23 = vld [vmem:[%s984_s21 + $0x168] sm:$0xff]  ;;  %v797_v24 = vpack.c.bf16 %v234_v21, %v228_v20  ;;  %v240_v26 = vld [vmem:[%s984_s21 + $0x130] sm:$0xff] }
  0x17   : > { %792 = vmatprep.subr.bf16.mxu0 %v791_v13  ;;  %v799_v25 = vpack.c.bf16 %v247_v23, %v241_v22  ;;  %v246_v27 = vld [vmem:[%s984_s21 + $0x160] sm:$0xff]  ;;  %v253_v28 = vld [vmem:[%s984_s21 + $0x198] sm:$0xff]  ;;  %v203_v29 = vld [vmem:[%s984_s21 + $0x8] sm:$0xff] }
  0x18   : > { %v209_v30 = vld [vmem:[%s984_s21 + $0x38] sm:$0xff]  ;;  %v259_v31 = vld [vmem:[%s984_s21 + $0x1c8] sm:$0xff]  ;;  %v202_v33 = vld [vmem:[%s984_s21] sm:$0xff]  ;;  %v801_v36 = vpack.c.bf16 %v246_v27, %v240_v26 }
  0x19   : > { %v723_v32 = vpack.c.bf16 %v209_v30, %v203_v29  ;;  %v208_v34 = vld [vmem:[%s984_s21 + $0x30] sm:$0xff]  ;;  %v215_v37 = vld [vmem:[%s984_s21 + $0x68] sm:$0xff]  ;;  %v221_v38 = vld [vmem:[%s984_s21 + $0x98] sm:$0xff]  ;;  %v803_v39 = vpack.c.bf16 %v259_v31, %v253_v28 }
  0x1a   : > { %v725_v35 = vpack.c.bf16 %v208_v34, %v202_v33  ;;  %v727_v40 = vpack.c.bf16 %v221_v38, %v215_v37  ;;  %v214_v41 = vld [vmem:[%s984_s21 + $0x60] sm:$0xff]  ;;  %v220_v42 = vld [vmem:[%s984_s21 + $0x90] sm:$0xff]  ;;  %v227_v43 = vld [vmem:[%s984_s21 + $0xc8] sm:$0xff] }
  0x1b   : > { %724 = vmatprep.subr.bf16.mxu1 %v723_v32  ;;  %v233_v44 = vld [vmem:[%s984_s21 + $0xf8] sm:$0xff]  ;;  %v252_v45 = vld [vmem:[%s984_s21 + $0x190] sm:$0xff]  ;;  %v258_v46 = vld [vmem:[%s984_s21 + $0x1c0] sm:$0xff]  ;;  %v729_v47 = vpack.c.bf16 %v220_v42, %v214_v41 }
  0x1c   : > { %726 = vmatpush1.bf16.xpose.msra.mxu1 %v725_v35  ;;  %v265_v48 = vld [vmem:[%s984_s21 + $0x1f8] sm:$0xff]  ;;  %v271_v49 = vld [vmem:[%s984_s21 + $0x228] sm:$0xff]  ;;  %v731_v50 = vpack.c.bf16 %v233_v44, %v227_v43  ;;  %v805_v51 = vpack.c.bf16 %v258_v46, %v252_v45  ;;  %v226_v53 = vld [vmem:[%s984_s21 + $0xc0] sm:$0xff] }
  0x1d   : > { %728 = vmatprep.subr.bf16.mxu1 %v727_v40  ;;  %v807_v52 = vpack.c.bf16 %v271_v49, %v265_v48  ;;  %v232_v54 = vld [vmem:[%s984_s21 + $0xf0] sm:$0xff]  ;;  %v239_v55 = vld [vmem:[%s984_s21 + $0x128] sm:$0xff]  ;;  %v245_v56 = vld [vmem:[%s984_s21 + $0x158] sm:$0xff] }
  0x1e   : > { %794 = vmatpush1.bf16.xpose.msra.mxu0 %v793_v18  ;;  %v264_v57 = vld [vmem:[%s984_s21 + $0x1f0] sm:$0xff]  ;;  %v270_v58 = vld [vmem:[%s984_s21 + $0x220] sm:$0xff]  ;;  %v733_v59 = vpack.c.bf16 %v232_v54, %v226_v53  ;;  %v277_v60 = vld [vmem:[%s984_s21 + $0x258] sm:$0xff]  ;;  %v735_v62 = vpack.c.bf16 %v245_v56, %v239_v55 }
  0x1f   : > { %796 = vmatprep.subr.bf16.mxu0 %v795_v19  ;;  %v283_v61 = vld [vmem:[%s984_s21 + $0x288] sm:$0xff]  ;;  %v809_v63 = vpack.c.bf16 %v270_v58, %v264_v57  ;;  %v238_v4 = vld [vmem:[%s984_s21 + $0x120] sm:$0xff]  ;;  %v244_v5 = vld [vmem:[%s984_s21 + $0x150] sm:$0xff] }
  0x20   : > { %v811_v3 = vpack.c.bf16 %v283_v61, %v277_v60  ;;  %v251_v6 = vld [vmem:[%s984_s21 + $0x188] sm:$0xff]  ;;  %v257_v7 = vld [vmem:[%s984_s21 + $0x1b8] sm:$0xff]  ;;  %v276_v8 = vld [vmem:[%s984_s21 + $0x250] sm:$0xff]  ;;  %v737_v10 = vpack.c.bf16 %v244_v5, %v238_v4 }
  0x21   : > { %v282_v9 = vld [vmem:[%s984_s21 + $0x280] sm:$0xff]  ;;  %v289_v11 = vld [vmem:[%s984_s21 + $0x2b8] sm:$0xff]  ;;  %v295_v12 = vld [vmem:[%s984_s21 + $0x2e8] sm:$0xff]  ;;  %v739_v13 = vpack.c.bf16 %v257_v7, %v251_v6 }
  0x22   : > { %v813_v14 = vpack.c.bf16 %v282_v9, %v276_v8  ;;  %v815_v15 = vpack.c.bf16 %v295_v12, %v289_v11  ;;  %v250_v16 = vld [vmem:[%s984_s21 + $0x180] sm:$0xff]  ;;  %v256_v17 = vld [vmem:[%s984_s21 + $0x1b0] sm:$0xff]  ;;  %v263_v18 = vld [vmem:[%s984_s21 + $0x1e8] sm:$0xff] }
  0x23   : > { %v269_v19 = vld [vmem:[%s984_s21 + $0x218] sm:$0xff]  ;;  %v288_v20 = vld [vmem:[%s984_s21 + $0x2b0] sm:$0xff]  ;;  %v294_v21 = vld [vmem:[%s984_s21 + $0x2e0] sm:$0xff]  ;;  %v741_v22 = vpack.c.bf16 %v256_v17, %v250_v16 }
  0x24   : > { %730 = vmatpush1.bf16.xpose.msra.mxu1 %v729_v47  ;;  %v301_v23 = vld [vmem:[%s984_s21 + $0x318] sm:$0xff]  ;;  %v817_v26 = vpack.c.bf16 %v294_v21, %v288_v20  ;;  %v262_v28 = vld [vmem:[%s984_s21 + $0x1e0] sm:$0xff]  ;;  %v268_v29 = vld [vmem:[%s984_s21 + $0x210] sm:$0xff] }
  0x25   : > { %732 = vmatprep.subr.bf16.mxu1 %v731_v50  ;;  %v275_v30 = vld [vmem:[%s984_s21 + $0x248] sm:$0xff]  ;;  %v281_v31 = vld [vmem:[%s984_s21 + $0x278] sm:$0xff]  ;;  %v300_v32 = vld [vmem:[%s984_s21 + $0x310] sm:$0xff]  ;;  %v745_v34 = vpack.c.bf16 %v268_v29, %v262_v28 }
  0x26   : > { %798 = vmatpush1.bf16.xpose.msra.mxu0 %v797_v24  ;;  %v307_v24 = vld [vmem:[%s984_s21 + $0x348] sm:$0xff]  ;;  %v306_v33 = vld [vmem:[%s984_s21 + $0x340] sm:$0xff]  ;;  %v313_v35 = vld [vmem:[%s984_s21 + $0x378] sm:$0xff]  ;;  %v747_v37 = vpack.c.bf16 %v281_v31, %v275_v30 }
  0x27   : > { %800 = vmatprep.subr.bf16.mxu0 %v799_v25  ;;  %v743_v25 = vpack.c.bf16 %v269_v19, %v263_v18  ;;  %v819_v27 = vpack.c.bf16 %v307_v24, %v301_v23  ;;  %v821_v38 = vpack.c.bf16 %v306_v33, %v300_v32  ;;  %v274_v40 = vld [vmem:[%s984_s21 + $0x240] sm:$0xff]  ;;  %v280_v41 = vld [vmem:[%s984_s21 + $0x270] sm:$0xff]  ;;  %v287_v42 = vld [vmem:[%s984_s21 + $0x2a8] sm:$0xff] }
  0x28   : > { %v293_v43 = vld [vmem:[%s984_s21 + $0x2d8] sm:$0xff]  ;;  %v312_v44 = vld [vmem:[%s984_s21 + $0x370] sm:$0xff]  ;;  %v318_v45 = vld [vmem:[%s984_s21 + $0x3a0] sm:$0xff]  ;;  %v749_v46 = vpack.c.bf16 %v280_v41, %v274_v40 }
  0x29   : > { %v325_v47 = vld [vmem:[%s984_s21 + $0x3d8] sm:$0xff]  ;;  %v331_v48 = vld [vmem:[%s984_s21 + $0x408] sm:$0xff]  ;;  %v751_v49 = vpack.c.bf16 %v293_v43, %v287_v42  ;;  %v825_v50 = vpack.c.bf16 %v318_v45, %v312_v44  ;;  %v292_v53 = vld [vmem:[%s984_s21 + $0x2d0] sm:$0xff] }
  0x2a   : > { %v299_v54 = vld [vmem:[%s984_s21 + $0x308] sm:$0xff]  ;;  %v305_v55 = vld [vmem:[%s984_s21 + $0x338] sm:$0xff]  ;;  %v324_v56 = vld [vmem:[%s984_s21 + $0x3d0] sm:$0xff] }
  0x2b   : > { %v330_v57 = vld [vmem:[%s984_s21 + $0x400] sm:$0xff]  ;;  %v343_v60 = vld [vmem:[%s984_s21 + $0x468] sm:$0xff]  ;;  %v755_v61 = vpack.c.bf16 %v305_v55, %v299_v54  ;;  %v304_v4 = vld [vmem:[%s984_s21 + $0x330] sm:$0xff] }
  0x2c   : > { %734 = vmatpush1.bf16.xpose.msra.mxu1 %v733_v59  ;;  %v337_v59 = vld [vmem:[%s984_s21 + $0x438] sm:$0xff]  ;;  %v311_v5 = vld [vmem:[%s984_s21 + $0x368] sm:$0xff]  ;;  %v336_v7 = vld [vmem:[%s984_s21 + $0x430] sm:$0xff] }
  0x2d   : > { %736 = vmatprep.subr.bf16.mxu1 %v735_v62  ;;  %v829_v62 = vpack.c.bf16 %v330_v57, %v324_v56  ;;  %v317_v6 = vld [vmem:[%s984_s21 + $0x398] sm:$0xff]  ;;  %v342_v8 = vld [vmem:[%s984_s21 + $0x460] sm:$0xff]  ;;  %v355_v11 = vld [vmem:[%s984_s21 + $0x4c8] sm:$0xff] }
  0x2e   : > { %802 = vmatpush1.bf16.xpose.msra.mxu0 %v801_v36  ;;  %v319_v36 = vld [vmem:[%s984_s21 + $0x3a8] sm:$0xff]  ;;  %v759_v12 = vpack.c.bf16 %v317_v6, %v311_v5  ;;  %v316_v16 = vld [vmem:[%s984_s21 + $0x390] sm:$0xff]  ;;  %v329_v18 = vld [vmem:[%s984_s21 + $0x3f8] sm:$0xff] }
  0x2f   : > { %804 = vmatprep.subr.bf16.mxu0 %v803_v39  ;;  %v823_v39 = vpack.c.bf16 %v319_v36, %v313_v35  ;;  %v323_v17 = vld [vmem:[%s984_s21 + $0x3c8] sm:$0xff]  ;;  %v348_v19 = vld [vmem:[%s984_s21 + $0x490] sm:$0xff]  ;;  %v354_v20 = vld [vmem:[%s984_s21 + $0x4c0] sm:$0xff] }
  0x30   : > { %v367_v23 = vld [vmem:[%s984_s21 + $0x528] sm:$0xff]  ;;  %v763_v24 = vpack.c.bf16 %v329_v18, %v323_v17  ;;  %v328_v28 = vld [vmem:[%s984_s21 + $0x3f0] sm:$0xff]  ;;  %v341_v30 = vld [vmem:[%s984_s21 + $0x458] sm:$0xff] }
  0x31   : > { %v335_v29 = vld [vmem:[%s984_s21 + $0x428] sm:$0xff]  ;;  %v360_v31 = vld [vmem:[%s984_s21 + $0x4f0] sm:$0xff]  ;;  %v366_v32 = vld [vmem:[%s984_s21 + $0x520] sm:$0xff] }
  0x32   : > { %v379_v35 = vld [vmem:[%s984_s21 + $0x588] sm:$0xff]  ;;  %v767_v36 = vpack.c.bf16 %v341_v30, %v335_v29  ;;  %v340_v40 = vld [vmem:[%s984_s21 + $0x450] sm:$0xff]  ;;  %v353_v42 = vld [vmem:[%s984_s21 + $0x4b8] sm:$0xff] }
  0x33   : > { %v347_v41 = vld [vmem:[%s984_s21 + $0x488] sm:$0xff]  ;;  %v372_v43 = vld [vmem:[%s984_s21 + $0x550] sm:$0xff]  ;;  %v378_v44 = vld [vmem:[%s984_s21 + $0x580] sm:$0xff] }
  0x34   : > { %738 = vmatpush1.bf16.xpose.msra.mxu1 %v737_v10  ;;  %v349_v10 = vld [vmem:[%s984_s21 + $0x498] sm:$0xff]  ;;  %v384_v55 = vld [vmem:[%s984_s21 + $0x5b0] sm:$0xff]  ;;  %v390_v56 = vld [vmem:[%s984_s21 + $0x5e0] sm:$0xff] }
  0x35   : > { %740 = vmatprep.subr.bf16.mxu1 %v739_v13  ;;  %v833_v13 = vpack.c.bf16 %v342_v8, %v336_v7  ;;  %v365_v54 = vld [vmem:[%s984_s21 + $0x518] sm:$0xff]  ;;  %v371_v5 = vld [vmem:[%s984_s21 + $0x548] sm:$0xff]  ;;  %v403_v7 = vsub.s32 1, %v974_v1  ;;  %v419_v8 = vsub.s32 5, %v974_v1 }
  0x36   : > { %806 = vmatpush1.bf16.xpose.msra.mxu0 %v805_v51  ;;  %v827_v51 = vpack.c.bf16 %v331_v48, %v325_v47  ;;  %v391_v47 = vld [vmem:[%s984_s21 + $0x5e8] sm:$0xff]  ;;  %v771_v48 = vpack.c.bf16 %v353_v42, %v347_v41  ;;  %v377_v6 = vld [vmem:[%s984_s21 + $0x578] sm:$0xff] }
  0x37   : > { %808 = vmatprep.subr.bf16.mxu0 %v807_v52  ;;  %v286_v52 = vld [vmem:[%s984_s21 + $0x2a0] sm:$0xff]  ;;  %v420_v18 = vrot.slane %v979_v2, %v419_v8  ;;  %v303_v8 = vld [vmem:[%s984_s21 + $0x328] sm:$0xff] }
  0x38   : > { %v753_v58 = vpack.c.bf16 %v292_v53, %v286_v52  ;;  %v352_v52 = vld [vmem:[%s984_s21 + $0x4b0] sm:$0xff]  ;;  %v359_v53 = vld [vmem:[%s984_s21 + $0x4e8] sm:$0xff] }
  0x3c   : > { %742 = vmatpush1.bf16.xpose.msra.mxu1 %v741_v22  ;;  %v361_v22 = vld [vmem:[%s984_s21 + $0x4f8] sm:$0xff] }
  0x3d   : > { %744 = vmatprep.subr.bf16.mxu1 %v743_v25  ;;  %v837_v25 = vpack.c.bf16 %v354_v20, %v348_v19  ;;  %v370_v20 = vld [vmem:[%s984_s21 + $0x540] sm:$0xff] }
  0x3e   : > { %810 = vmatpush1.bf16.xpose.msra.mxu0 %v809_v63  ;;  %v831_v63 = vpack.c.bf16 %v343_v60, %v337_v59  ;;  %v213_v59 = vld [vmem:[%s984_s21 + $0x58] sm:$0xff]  ;;  %v775_v60 = vpack.c.bf16 %v365_v54, %v359_v53 }
  0x3f   : > { %812 = vmatprep.subr.bf16.mxu0 %v811_v3  ;;  %v298_v3 = vld [vmem:[%s984_s21 + $0x300] sm:$0xff] }
  0x40   : > { %v757_v9 = vpack.c.bf16 %v304_v4, %v298_v3  ;;  %v364_v3 = vld [vmem:[%s984_s21 + $0x510] sm:$0xff]  ;;  %v407_v4 = vsub.s32 2, %v974_v1 }
  0x44   : > { %746 = vmatpush1.bf16.xpose.msra.mxu1 %v745_v34  ;;  %v373_v34 = vld [vmem:[%s984_s21 + $0x558] sm:$0xff] }
  0x45   : > { %748 = vmatprep.subr.bf16.mxu1 %v747_v37  ;;  %v841_v37 = vpack.c.bf16 %v366_v32, %v360_v31  ;;  %v382_v32 = vld [vmem:[%s984_s21 + $0x5a0] sm:$0xff] }
  0x46   : > { %814 = vmatpush1.bf16.xpose.msra.mxu0 %v813_v14  ;;  %v835_v14 = vpack.c.bf16 %v355_v11, %v349_v10  ;;  %v212_v10 = vld [vmem:[%s984_s21 + $0x50] sm:$0xff] }
  0x47   : > { %816 = vmatprep.subr.bf16.mxu0 %v815_v15  ;;  %v310_v15 = vld [vmem:[%s984_s21 + $0x360] sm:$0xff] }
  0x48   : > { %v761_v21 = vpack.c.bf16 %v316_v16, %v310_v15  ;;  %v779_v15 = vpack.c.bf16 %v377_v6, %v371_v5  ;;  %v408_v16 = vrot.slane %v979_v2, %v407_v4  ;;  %v290_v6 = vld [vmem:[%s984_s21 + $0x2c0] sm:$0xff] }
  0x4c   : > { %750 = vmatpush1.bf16.xpose.msra.mxu1 %v749_v46  ;;  %v385_v46 = vld [vmem:[%s984_s21 + $0x5b8] sm:$0xff] }
  0x4d   : > { %752 = vmatprep.subr.bf16.mxu1 %v751_v49  ;;  %v845_v49 = vpack.c.bf16 %v378_v44, %v372_v43  ;;  %v242_v43 = vld [vmem:[%s984_s21 + $0x140] sm:$0xff]  ;;  %v248_v44 = vld [vmem:[%s984_s21 + $0x170] sm:$0xff] }
  0x4e   : > { %818 = vmatpush1.bf16.xpose.msra.mxu0 %v817_v26  ;;  %v839_v26 = vpack.c.bf16 %v367_v23, %v361_v22  ;;  %v383_v22 = vld [vmem:[%s984_s21 + $0x5a8] sm:$0xff]  ;;  %v389_v23 = vld [vmem:[%s984_s21 + $0x5d8] sm:$0xff] }
  0x4f   : > { %820 = vmatprep.subr.bf16.mxu0 %v819_v27  ;;  %v322_v27 = vld [vmem:[%s984_s21 + $0x3c0] sm:$0xff]  ;;  %v783_v29 = vpack.c.bf16 %v389_v23, %v383_v22 }
  0x50   : > { %v765_v33 = vpack.c.bf16 %v328_v28, %v322_v27  ;;  %v231_v27 = vld [vmem:[%s984_s21 + $0xe8] sm:$0xff]  ;;  %v237_v28 = vld [vmem:[%s984_s21 + $0x118] sm:$0xff] }
  0x51   : > { %v859_v31 = vpack.c.bf16 %v237_v28, %v231_v27  ;;  %v345_v27 = vld [vmem:[%s984_s21 + $0x478] sm:$0xff] }
  0x54   : > { %754 = vmatpush1.bf16.xpose.msra.mxu1 %v753_v58  ;;  %v207_v58 = vld [vmem:[%s984_s21 + $0x28] sm:$0xff] }
  0x55   : > { %756 = vmatprep.subr.bf16.mxu1 %v755_v61  ;;  %v849_v61 = vpack.c.bf16 %v390_v56, %v384_v55  ;;  %v266_v55 = vld [vmem:[%s984_s21 + $0x200] sm:$0xff]  ;;  %v272_v56 = vld [vmem:[%s984_s21 + $0x230] sm:$0xff] }
  0x56   : > { %822 = vmatpush1.bf16.xpose.msra.mxu0 %v821_v38  ;;  %v843_v38 = vpack.c.bf16 %v379_v35, %v373_v34  ;;  %v230_v34 = vld [vmem:[%s984_s21 + $0xe0] sm:$0xff]  ;;  %v236_v35 = vld [vmem:[%s984_s21 + $0x110] sm:$0xff] }
  0x57   : > { %824 = vmatprep.subr.bf16.mxu0 %v823_v39  ;;  %v334_v39 = vld [vmem:[%s984_s21 + $0x420] sm:$0xff] }
  0x58   : > { %v769_v45 = vpack.c.bf16 %v340_v40, %v334_v39  ;;  %v861_v39 = vpack.c.bf16 %v236_v35, %v230_v34  ;;  %v399_v40 = vsub.s32 0, %v974_v1 }
  0x5a   : > { %v400_v42 = vrot.slane %v979_v2, %v399_v40 }
  0x5c   : > { %758 = vmatpush1.bf16.xpose.msra.mxu1 %v757_v9  ;;  %v206_v9 = vld [vmem:[%s984_s21 + $0x20] sm:$0xff] }
  0x5d   : > { %760 = vmatprep.subr.bf16.mxu1 %v759_v12  ;;  %v404_v12 = vrot.slane %v979_v2, %v403_v7  ;;  %v853_v17 = vpack.c.bf16 %v212_v10, %v206_v9  ;;  %v296_v7 = vld [vmem:[%s984_s21 + $0x2f0] sm:$0xff]  ;;  %v309_v9 = vld [vmem:[%s984_s21 + $0x358] sm:$0xff] }
  0x5e   : > { %826 = vmatpush1.bf16.xpose.msra.mxu0 %v825_v50  ;;  %v847_v50 = vpack.c.bf16 %v391_v47, %v385_v46  ;;  %v261_v46 = vld [vmem:[%s984_s21 + $0x1d8] sm:$0xff]  ;;  %v865_v47 = vpack.c.bf16 %v248_v44, %v242_v43  ;;  %v881_v10 = vpack.c.bf16 %v296_v7, %v290_v6  ;;  %v368_v43 = vld [vmem:[%s984_s21 + $0x530] sm:$0xff]  ;;  %v375_v44 = vld [vmem:[%s984_s21 + $0x568] sm:$0xff] }
  0x5f   : > { %828 = vmatprep.subr.bf16.mxu0 %v827_v51  ;;  %v346_v51 = vld [vmem:[%s984_s21 + $0x480] sm:$0xff]  ;;  %491 = vmatprep.mubr.f32.mxu1 %v404_v12 }
  0x60   : > { %v773_v57 = vpack.c.bf16 %v352_v52, %v346_v51  ;;  %v267_v51 = vld [vmem:[%s984_s21 + $0x208] sm:$0xff]  ;;  %v273_v52 = vld [vmem:[%s984_s21 + $0x238] sm:$0xff]  ;;  %v302_v12 = vld [vmem:[%s984_s21 + $0x320] sm:$0xff] }
  0x61   : > { %v871_v54 = vpack.c.bf16 %v273_v52, %v267_v51  ;;  %v393_v51 = vld [vmem:[%s984_s21 + $0x5f8] sm:$0xff] }
  0x64   : > { %762 = vmatpush1.bf16.xpose.msra.mxu1 %v761_v21  ;;  %v376_v21 = vld [vmem:[%s984_s21 + $0x570] sm:$0xff] }
  0x65   : > { %764 = vmatprep.subr.bf16.mxu1 %v763_v24  ;;  %v218_v24 = vld [vmem:[%s984_s21 + $0x80] sm:$0xff] }
  0x66   : > { %830 = vmatpush1.bf16.xpose.msra.mxu0 %v829_v62  ;;  %v851_v62 = vpack.c.bf16 %v213_v59, %v207_v58  ;;  %v285_v58 = vld [vmem:[%s984_s21 + $0x298] sm:$0xff]  ;;  %v873_v59 = vpack.c.bf16 %v272_v56, %v266_v55  ;;  %v392_v55 = vld [vmem:[%s984_s21 + $0x5f0] sm:$0xff] }
  0x67   : > { %832 = vmatprep.subr.bf16.mxu0 %v831_v63  ;;  %v358_v63 = vld [vmem:[%s984_s21 + $0x4e0] sm:$0xff] }
  0x68   : > { %v777_v11 = vpack.c.bf16 %v364_v3, %v358_v63  ;;  %v291_v63 = vld [vmem:[%s984_s21 + $0x2c8] sm:$0xff]  ;;  %v297_v3 = vld [vmem:[%s984_s21 + $0x2f8] sm:$0xff] }
  0x69   : > { %v879_v5 = vpack.c.bf16 %v297_v3, %v291_v63 }
  0x6c   : > { %766 = vmatpush1.bf16.xpose.msra.mxu1 %v765_v33  ;;  %v388_v33 = vld [vmem:[%s984_s21 + $0x5d0] sm:$0xff] }
  0x6d   : > { %768 = vmatprep.subr.bf16.mxu1 %v767_v36  ;;  %v785_v36 = vpack.c.bf16 %v388_v33, %v382_v32  ;;  %v351_v32 = vld [vmem:[%s984_s21 + $0x4a8] sm:$0xff]  ;;  %v357_v33 = vld [vmem:[%s984_s21 + $0x4d8] sm:$0xff] }
  0x6e   : > { %834 = vmatpush1.bf16.xpose.msra.mxu0 %v833_v13  ;;  %v219_v13 = vld [vmem:[%s984_s21 + $0x88] sm:$0xff]  ;;  %v899_v35 = vpack.c.bf16 %v357_v33, %v351_v32 }
  0x6f   : > { %836 = vmatprep.subr.bf16.mxu0 %v835_v14  ;;  %v225_v14 = vld [vmem:[%s984_s21 + $0xb8] sm:$0xff] }
  0x70   : > { %v855_v19 = vpack.c.bf16 %v225_v14, %v219_v13  ;;  %v308_v13 = vld [vmem:[%s984_s21 + $0x350] sm:$0xff]  ;;  %v315_v14 = vld [vmem:[%s984_s21 + $0x388] sm:$0xff] }
  0x74   : > { %770 = vmatpush1.bf16.xpose.msra.mxu1 %v769_v45  ;;  %v255_v45 = vld [vmem:[%s984_s21 + $0x1a8] sm:$0xff] }
  0x75   : > { %772 = vmatprep.subr.bf16.mxu1 %v771_v48  ;;  %v867_v48 = vpack.c.bf16 %v261_v46, %v255_v45  ;;  %v381_v45 = vld [vmem:[%s984_s21 + $0x598] sm:$0xff] }
  0x76   : > { %838 = vmatpush1.bf16.xpose.msra.mxu0 %v837_v25  ;;  %v224_v25 = vld [vmem:[%s984_s21 + $0xb0] sm:$0xff] }
  0x77   : > { %840 = vmatprep.subr.bf16.mxu0 %v839_v26  ;;  %v781_v26 = vpack.c.bf16 %v376_v21, %v370_v20  ;;  %v857_v30 = vpack.c.bf16 %v224_v25, %v218_v24  ;;  %v327_v20 = vld [vmem:[%s984_s21 + $0x3e8] sm:$0xff]  ;;  %v333_v21 = vld [vmem:[%s984_s21 + $0x418] sm:$0xff]  ;;  %v326_v24 = vld [vmem:[%s984_s21 + $0x3e0] sm:$0xff] }
  0x78   : > { %v891_v23 = vpack.c.bf16 %v333_v21, %v327_v20  ;;  %v332_v25 = vld [vmem:[%s984_s21 + $0x410] sm:$0xff] }
  0x79   : > { %v893_v28 = vpack.c.bf16 %v332_v25, %v326_v24 }
  0x7c   : > { %774 = vmatpush1.bf16.xpose.msra.mxu1 %v773_v57  ;;  %v279_v57 = vld [vmem:[%s984_s21 + $0x268] sm:$0xff] }
  0x7d   : > { %776 = vmatprep.subr.bf16.mxu1 %v775_v60  ;;  %v875_v60 = vpack.c.bf16 %v285_v58, %v279_v57  ;;  %v415_v57 = vsub.s32 4, %v974_v1 }
  0x7e   : > { %842 = vmatpush1.bf16.xpose.msra.mxu0 %v841_v37  ;;  %v243_v37 = vld [vmem:[%s984_s21 + $0x148] sm:$0xff] }
  0x7f   : > { %844 = vmatprep.subr.bf16.mxu0 %v843_v38  ;;  %v249_v38 = vld [vmem:[%s984_s21 + $0x178] sm:$0xff]  ;;  %v416_v58 = vrot.slane %v979_v2, %v415_v57 }
  0x80   : > { %v863_v41 = vpack.c.bf16 %v249_v38, %v243_v37  ;;  %v356_v37 = vld [vmem:[%s984_s21 + $0x4d0] sm:$0xff]  ;;  %v363_v38 = vld [vmem:[%s984_s21 + $0x508] sm:$0xff] }
  0x84   : > { %778 = vmatpush1.bf16.xpose.msra.mxu1 %v777_v11  ;;  %v883_v11 = vpack.c.bf16 %v309_v9, %v303_v8 }
  0x85   : > { %780 = vmatprep.subr.bf16.mxu1 %v779_v15  ;;  %v321_v15 = vld [vmem:[%s984_s21 + $0x3b8] sm:$0xff] }
  0x86   : > { %846 = vmatpush1.bf16.xpose.msra.mxu0 %v845_v49  ;;  %v254_v49 = vld [vmem:[%s984_s21 + $0x1a0] sm:$0xff] }
  0x87   : > { %848 = vmatprep.subr.bf16.mxu0 %v847_v50  ;;  %v260_v50 = vld [vmem:[%s984_s21 + $0x1d0] sm:$0xff] }
  0x88   : > { %v869_v53 = vpack.c.bf16 %v260_v50, %v254_v49  ;;  %v380_v49 = vld [vmem:[%s984_s21 + $0x590] sm:$0xff]  ;;  %v387_v50 = vld [vmem:[%s984_s21 + $0x5c8] sm:$0xff] }
  0x8c   : > { %782 = vmatpush1.bf16.xpose.msra.mxu1 %v781_v26  ;;  %v339_v26 = vld [vmem:[%s984_s21 + $0x448] sm:$0xff] }
  0x8d   : > { %784 = vmatprep.subr.bf16.mxu1 %v783_v29  ;;  %v895_v29 = vpack.c.bf16 %v345_v27, %v339_v26 }
  0x8e   : > { %850 = vmatpush1.bf16.xpose.msra.mxu0 %v849_v61  ;;  %v278_v61 = vld [vmem:[%s984_s21 + $0x260] sm:$0xff] }
  0x8f   : > { %852 = vmatprep.subr.bf16.mxu0 %v851_v62  ;;  %v284_v62 = vld [vmem:[%s984_s21 + $0x290] sm:$0xff] }
  0x90   : > { %v877_v4 = vpack.c.bf16 %v284_v62, %v278_v61  ;;  %v395_v61 = vstv %s394_s22  ;;  %v939_v62 = vmov 1966171168  }
  0x91   : > { %v644_v63 = vunpack.c.l.s4 %v939_v62 }
  0x94   : > { %786 = vmatpush1.bf16.xpose.msra.mxu1 %v785_v36  ;;  %v350_v36 = vld [vmem:[%s984_s21 + $0x4a0] sm:$0xff] }
  0x95   : > { %563 = vmatmul.mubr.f32.vlgmr.msra.gmra.mrb[0].mxu0 %v408_v16  ;;  %v885_v16 = vpack.c.bf16 %v308_v13, %v302_v12  ;;  %v901_v40 = vpack.c.bf16 %v356_v37, %v350_v36 }
  0x96   : > { %854 = vmatpush1.bf16.xpose.msra.mxu0 %v853_v17  ;;  %633 = vmatprep.mubr.f32.mxu0 %v420_v18  ;;  %v887_v17 = vpack.c.bf16 %v321_v15, %v315_v14  ;;  %v314_v18 = vld [vmem:[%s984_s21 + $0x380] sm:$0xff] }
  0x97   : > { %856 = vmatprep.subr.bf16.mxu0 %v855_v19  ;;  %v320_v19 = vld [vmem:[%s984_s21 + $0x3b0] sm:$0xff] }
  0x98   : > { %v889_v22 = vpack.c.bf16 %v320_v19, %v314_v18 }
  0x9b   : > { %492 = vmatmul.mubr.f32.vlgmr.msra.gmra.mrb[0].mxu1 %v400_v42  ;;  %v362_v42 = vld [vmem:[%s984_s21 + $0x500] sm:$0xff] }
  0x9c   : > { %v905_v46 = vpack.c.bf16 %v368_v43, %v362_v42 }
  0x9e   : > { %858 = vmatpush1.bf16.xpose.msra.mxu0 %v857_v30  ;;  %v338_v30 = vld [vmem:[%s984_s21 + $0x440] sm:$0xff] }
  0x9f   : > { %860 = vmatprep.subr.bf16.mxu0 %v859_v31  ;;  %v344_v31 = vld [vmem:[%s984_s21 + $0x470] sm:$0xff] }
  0xa0   : > { %v897_v34 = vpack.c.bf16 %v344_v31, %v338_v30 }
  0xa6   : > { %862 = vmatpush1.bf16.xpose.msra.mxu0 %v861_v39  ;;  %v369_v39 = vld [vmem:[%s984_s21 + $0x538] sm:$0xff] }
  0xa7   : > { %864 = vmatprep.subr.bf16.mxu0 %v863_v41  ;;  %v903_v41 = vpack.c.bf16 %v369_v39, %v363_v38 }
  0xae   : > { %866 = vmatpush1.bf16.xpose.msra.mxu0 %v865_v47  ;;  %v907_v47 = vpack.c.bf16 %v381_v45, %v375_v44 }
  0xaf   : > { %868 = vmatprep.subr.bf16.mxu0 %v867_v48  ;;  %v374_v48 = vld [vmem:[%s984_s21 + $0x560] sm:$0xff] }
  0xb0   : > { %v909_v52 = vpack.c.bf16 %v380_v49, %v374_v48 }
  0xb6   : > { %870 = vmatpush1.bf16.xpose.msra.mxu0 %v869_v53  ;;  %v911_v53 = vpack.c.bf16 %v393_v51, %v387_v50 }
  0xb7   : > { %872 = vmatprep.subr.bf16.mxu0 %v871_v54  ;;  %v386_v54 = vld [vmem:[%s984_s21 + $0x5c0] sm:$0xff] }
  0xb8   : > { %v913_v56 = vpack.c.bf16 %v392_v55, %v386_v54 }
  0xbe   : > { %874 = vmatpush1.bf16.xpose.msra.mxu0 %v873_v59 }
  0xbf   : > { %876 = vmatprep.subr.bf16.mxu0 %v875_v60 }
  0xc6   : > { %878 = vmatpush1.bf16.xpose.msra.mxu0 %v877_v4 }
  0xc7   : > { %880 = vmatprep.subr.bf16.mxu0 %v879_v5  ;;  %v645_v5 = vunpack.c.0.s8 %v644_v63 }
  0xce   : > { %882 = vmatpush1.bf16.xpose.msra.mxu0 %v881_v10  ;;  %v648_v10 = vsub.s32 %v645_v5, %v974_v1 }
  0xcf   : > { %884 = vmatprep.subr.bf16.mxu0 %v883_v11 }
  0xd6   : > { %886 = vmatpush1.bf16.xpose.msra.mxu0 %v885_v16 }
  0xd7   : > { %888 = vmatprep.subr.bf16.mxu0 %v887_v17 }
  0xde   : > { %890 = vmatpush1.bf16.xpose.msra.mxu0 %v889_v22 }
  0xdf   : > { %892 = vmatprep.subr.bf16.mxu0 %v891_v23 }
  0xe6   : > { %894 = vmatpush1.bf16.xpose.msra.mxu0 %v893_v28 }
  0xe7   : > { %896 = vmatprep.subr.bf16.mxu0 %v895_v29 }
  0xee   : > { %898 = vmatpush1.bf16.xpose.msra.mxu0 %v897_v34 }
  0xef   : > { %900 = vmatprep.subr.bf16.mxu0 %v899_v35 }
  0xf6   : > { %902 = vmatpush1.bf16.xpose.msra.mxu0 %v901_v40 }
  0xf7   : > { %904 = vmatprep.subr.bf16.mxu0 %v903_v41 }
  0xfe   : > { %906 = vmatpush1.bf16.xpose.msra.mxu0 %v905_v46 }
  0xff   : > { %908 = vmatprep.subr.bf16.mxu0 %v907_v47 }
 0x106   : > { %910 = vmatpush1.bf16.xpose.msra.mxu0 %v909_v52 }
 0x107   : > { %912 = vmatprep.subr.bf16.mxu0 %v911_v53 }
 0x10e   : > { %914 = vmatpush1.bf16.xpose.msra.mxu0 %v913_v56 }
 0x115   : > { %634 = vmatmul.mubr.f32.vlgmr.msra.gmra.mrb[0].mxu0 %v416_v58 }
 0x16e   : > { %v493_v59 = vpop.f32.mrb[0].mxu1 }
 0x16f   : > { %v495_v60 = vpop.f32.mrb[1].mxu1  ;;  %v494_v3 = vadd.f32 %v493_v59, %v395_v61 }
 0x170   : > { %v496_v4 = vadd.f32 %v495_v60, %v395_v61 }
 0x1e8   : > { %v635_v6 = vpop.f32.mrb[0].mxu0 }
 0x1e9   : > { %v916_v7 = vadd.f32 %v635_v6, %v494_v3  ;;  %v637_v8 = vpop.f32.mrb[1].mxu0 }
 0x1ea   : > { %v918_v9 = vadd.f32 %v637_v8, %v496_v4 }
 0x1ec   : > { %v642_v2 = vcombine.low %v916_v7, %v918_v9 }
 0x1ee   : > { %v649_v11 = vrot.slane %v642_v2, %v648_v10 }
 0x1f0   : > { %v656_v12 = vrot.slane %v649_v11, %v648_v10 }
 0x1f2   : > { %662 = vst.msk [vmem:[%s199_s26] sm:$0x3] %vm660_vm0, %v656_v12 }
 0x1f3 PF: > { %s14_s14 = sadd.s32 1, %s937_s14  }
 0x1f4   : > { %p11_p5 = scmp.ge.s32.totalorder %s14_s14, 4  }
 0x1f6   :  { %13 = sbr.rel (!%p11_p5) target bundleno = 2 (0x2), region = 62 }

</bundles_post_ra>
